<compile_context>
chip_gen: v7x
topology: tpu7x:2x2x1
jax: 0.10.0
libtpu: 0.0.40
codegen_flags: <defaults>
</compile_context>

<pallas_src>
import jax
import jax.numpy as jnp
from jax import lax
from jax.experimental import pallas as pl
from jax.experimental.pallas import tpu as pltpu


def _round_up(n, m):
    return ((n + m - 1) // m) * m


def _make_kernel(tq, m2p, ob, nq):
    """Build the kernel for a given (query-tile, padded-M2, o-chunk, #q-tiles)."""

    def kernel(x_ref, wh_ref, bh_ref, wd_ref, bd_ref, w_ref, o_ref,
               hh_ref, hd_ref):
        # x_ref : (Sk, Rp)          wh_ref: (Rp, M1p)   bh_ref: (1, M1p) f32
        #                           wd_ref: (Rp, M2p)   bd_ref: (1, M2p) f32
        # w_ref : (M1p, Ob*M2p)     biaffine weight chunk, o laid out on lanes
        # o_ref : (Ob, Tq, Sk) f32
        # hh_ref: (Tq, M1p) scratch (compute dtype), per (b, q-tile)
        # hd_ref: (Sk, M2p) scratch (compute dtype), per sentence b
        q = pl.program_id(1)
        oc = pl.program_id(2)

        # Dep MLP: depends only on the sentence b -> compute once per b (first
        # q tile, first o chunk) and keep resident across the whole q/o loops.
        @pl.when(jnp.logical_and(q == 0, oc == 0))
        def _():
            hd = jnp.dot(x_ref[...], wd_ref[...],
                         preferred_element_type=jnp.float32)
            hd_ref[...] = jnp.maximum(hd + bd_ref[...], 0.0).astype(hd_ref.dtype)

        # Head MLP: once per (b, q-tile), reused for every output channel.
        @pl.when(oc == 0)
        def _():
            if nq == 1:
                row0 = 0
            else:
                row0 = pl.multiple_of(q * tq, tq)   # tq is 128/256 when nq > 1
            xq = x_ref[pl.ds(row0, tq), :]
            hh = jnp.dot(xq, wh_ref[...], preferred_element_type=jnp.float32)
            hh_ref[...] = jnp.maximum(hh + bh_ref[...], 0.0).astype(hh_ref.dtype)

        # One wide matmul for all Ob channels of this chunk: N = Ob*M2p keeps
        # the 256-wide MXU (v6e/v7x) full even when mlp+1 pads to only 128.
        t = jnp.dot(hh_ref[...], w_ref[...],
                    preferred_element_type=jnp.float32)       # (Tq, Ob*M2p) f32
        t = t.astype(hd_ref.dtype)                            # bf16 for the MXU
        hd = hd_ref[...]
        for o in range(ob):                                   # static unroll
            t_o = t[:, o * m2p:(o + 1) * m2p]                 # (Tq, M2p)
            # Contract the last dims of both operands (trans_b matmul on the
            # MXU; avoids materializing hd^T through the XLU).
            o_ref[o] = lax.dot_general(
                t_o, hd,
                dimension_numbers=(((1,), (1,)), ((), ())),
                preferred_element_type=jnp.float32)           # (Tq, Sk)

    return kernel


def deep_biaffine_scorer(x, wh, bh, wd, bd, weight, *, bias_x=True, bias_y=True,
                         compute_dtype=jnp.bfloat16):
    """x: (B,S,R) f32.  wh/wd: torch-layout (mlp, R).  bh/bd: (mlp,).
    weight: (out_size, mlp+bias_x, mlp+bias_y)."""
    B, S, R = x.shape
    out_size, M1, M2 = weight.shape
    f32 = jnp.float32

    # ---- parameter glue (plain JAX): (R, M) layout; fold the "concat ones"
    #      bias columns into the MLP (zero weight column + bias 1 -> relu==1) --
    wh_t, bh_p = wh.T.astype(f32), bh.astype(f32)
    wd_t, bd_p = wd.T.astype(f32), bd.astype(f32)
    if bias_x:
        wh_t = jnp.concatenate([wh_t, jnp.zeros((R, 1), f32)], axis=-1)
        bh_p = jnp.concatenate([bh_p, jnp.ones((1,), f32)])
    if bias_y:
        wd_t = jnp.concatenate([wd_t, jnp.zeros((R, 1), f32)], axis=-1)
        bd_p = jnp.concatenate([bd_p, jnp.ones((1,), f32)])
    assert wh_t.shape == (R, M1) and wd_t.shape == (R, M2)

    # ---- padded / tiled shapes ----------------------------------------------
    Rp = _round_up(R, 128)
    M1p = _round_up(M1, 128)
    M2p = _round_up(M2, 128)
    Sk = _round_up(S, 128)          # key/lane dim of the output: 128-multiple
    if S <= 256:                    # query rows only need sublane alignment
        Tq = _round_up(S, 16)
        nQ = 1
    else:                           # tile query rows to bound the f32 out block
        Tq = 256 if Sk % 256 == 0 else 128
        nQ = Sk // Tq
    SqT = nQ * Tq                   # total padded query rows (<= Sk)

    isz = jnp.dtype(compute_dtype).itemsize

    # ---- pick the o-chunk Ob: as many channels per grid step as fit a
    #      conservative VMEM budget (safe even on v7x's 64 MiB) ----------------
    base_bytes = (2 * Sk * Rp * isz                      # x block (double buf)
                  + 2 * Rp * (M1p + M2p) * isz           # MLP weights
                  + 2 * (M1p + M2p) * 4                  # MLP biases (f32)
                  + Tq * M1p * isz + Sk * M2p * isz)     # hh / hd scratch
    per_o_bytes = (2 * Tq * Sk * 4                       # output block (dbl buf)
                   + 2 * M1p * M2p * isz                 # weight slice (dbl buf)
                   + Tq * M2p * 6)                       # t intermediate
    budget = 40 << 20
    Ob = int(max(1, min(out_size, (budget - base_bytes) // per_o_bytes)))
    Op = _round_up(out_size, Ob)
    nO = Op // Ob

    # ---- zero-pad & cast the operands ---------------------------------------
    cdt = compute_dtype
    x_p = jnp.pad(x.astype(cdt), ((0, 0), (0, Sk - S), (0, Rp - R)))
    wh_p = jnp.pad(wh_t, ((0, Rp - R), (0, M1p - M1))).astype(cdt)
    wd_p = jnp.pad(wd_t, ((0, Rp - R), (0, M2p - M2))).astype(cdt)
    bh_pp = jnp.pad(bh_p, (0, M1p - M1)).reshape(1, M1p)          # stays f32
    bd_pp = jnp.pad(bd_p, (0, M2p - M2)).reshape(1, M2p)          # stays f32
    # Biaffine weight laid out as (M1p, Op*M2p): each o-chunk is a contiguous
    # lane slice, so hh @ W_chunk is one wide matmul (no in-kernel transpose).
    w_p = jnp.pad(weight.astype(f32),
                  ((0, Op - out_size), (0, M1p - M1), (0, M2p - M2)))
    w_r = jnp.transpose(w_p, (1, 0, 2)).reshape(M1p, Op * M2p).astype(cdt)

    # ---- cost estimate & VMEM budget -----------------------------------------
    flops = int(B * (2 * Sk * Rp * M2p + 2 * SqT * Rp * M1p)      # MLPs
                + B * (2 * SqT * M1p * Op * M2p                   # hh @ W
                       + 2 * SqT * Sk * Op * M2p))                # (.) @ hd^T
    bytes_accessed = int(isz * (x_p.size + wh_p.size + wd_p.size + w_r.size)
                         + 4 * (bh_pp.size + bd_pp.size)
                         + 4 * B * Op * SqT * Sk)
    cost = pl.CostEstimate(flops=flops, transcendentals=0,
                           bytes_accessed=bytes_accessed)

    vmem_need = base_bytes + Ob * per_o_bytes
    try:
        cap = int(pltpu.get_tpu_info().vmem_capacity_bytes)
    except Exception:  # pragma: no cover - conservative fallback
        cap = 64 << 20
    # ~15% headroom below physical VMEM (Mosaic internal scratch / semaphores);
    # on v5e/v6e (128 MiB) this allows well above 64 MiB for big shapes.
    vmem_limit = int(min(max(int(1.3 * vmem_need), 32 << 20), int(0.85 * cap)))

    kernel = _make_kernel(Tq, M2p, Ob, nQ)
    s = pl.pallas_call(
        kernel,
        out_shape=jax.ShapeDtypeStruct((B, Op, SqT, Sk), jnp.float32),
        grid=(B, nQ, nO),
        in_specs=[
            pl.BlockSpec((None, Sk, Rp), lambda b, q, oc: (b, 0, 0)),    # x[b]
            pl.BlockSpec((Rp, M1p), lambda b, q, oc: (0, 0)),            # head W
            pl.BlockSpec((1, M1p), lambda b, q, oc: (0, 0)),             # head b
            pl.BlockSpec((Rp, M2p), lambda b, q, oc: (0, 0)),            # dep W
            pl.BlockSpec((1, M2p), lambda b, q, oc: (0, 0)),             # dep b
            pl.BlockSpec((M1p, Ob * M2p), lambda b, q, oc: (0, oc)),     # W[o-chunk]
        ],
        out_specs=pl.BlockSpec((None, Ob, Tq, Sk),
                               lambda b, q, oc: (b, oc, q, 0)),
        scratch_shapes=[
            pltpu.VMEM((Tq, M1p), cdt),   # hh, resident across the o axis
            pltpu.VMEM((Sk, M2p), cdt),   # hd, resident across the q & o axes
        ],
        compiler_params=pltpu.CompilerParams(
            # b independent -> "parallel" (megacore on v7x).  q and o MUST be
            # "arbitrary": hd persists across both, hh across o.
            dimension_semantics=("parallel", "arbitrary", "arbitrary"),
            vmem_limit_bytes=vmem_limit,
        ),
        cost_estimate=cost,
    )(x_p, wh_p, bh_pp, wd_p, bd_pp, w_r)

    # strip padding; torch: s.squeeze(1) only squeezes if out_size == 1
    s = s[:, :out_size, :S, :S]
    if out_size == 1:
        s = jnp.squeeze(s, axis=1)
    return s


def _reference(x, wh, bh, wd, bd, weight, *, bias_x=True, bias_y=True):
    hh = jax.nn.relu(x @ wh.T + bh)
    hd = jax.nn.relu(x @ wd.T + bd)
    if bias_x:
        hh = jnp.concatenate([hh, jnp.ones_like(hh[..., :1])], axis=-1)
    if bias_y:
        hd = jnp.concatenate([hd, jnp.ones_like(hd[..., :1])], axis=-1)
    s = jnp.einsum("bxi,oij,byj->boxy", hh, weight, hd)
    if s.shape[1] == 1:
        s = jnp.squeeze(s, axis=1)
    return s


def _run_case(key, *, B, S, rnn_size, mlp_size, out_size, bias_x, bias_y,
              compute_dtype, atol, rtol):
    kx, kwh, kbh, kwd, kbd, kw = jax.random.split(key, 6)
    x = jax.random.normal(kx, (B, S, rnn_size), dtype=jnp.float32)
    # torch-layout linear weights: (mlp, rnn).  NOTE: reset_parameters() zeros
    # the biaffine weight; deterministic random init keeps the test non-trivial.
    wh = jax.random.normal(kwh, (mlp_size, rnn_size), dtype=jnp.float32) * 0.1
    bh = jax.random.normal(kbh, (mlp_size,), dtype=jnp.float32) * 0.1
    wd = jax.random.normal(kwd, (mlp_size, rnn_size), dtype=jnp.float32) * 0.1
    bd = jax.random.normal(kbd, (mlp_size,), dtype=jnp.float32) * 0.1
    weight = jax.random.normal(
        kw, (out_size, mlp_size + int(bias_x), mlp_size + int(bias_y)),
        dtype=jnp.float32) * 0.1

    out = deep_biaffine_scorer(x, wh, bh, wd, bd, weight, bias_x=bias_x,
                               bias_y=bias_y, compute_dtype=compute_dtype)
    out = jax.block_until_ready(out)
    ref = _reference(x, wh, bh, wd, bd, weight, bias_x=bias_x, bias_y=bias_y)
    assert out.shape == ref.shape, (out.shape, ref.shape)
    err = float(jnp.max(jnp.abs(out - ref)))
    assert jnp.allclose(out, ref, atol=atol, rtol=rtol), err


if __name__ == "__main__":
    key = jax.random.PRNGKey(0)
    k1, k2 = jax.random.split(key)

    # Arc-scorer-like config (out_size=1), bf16 MXU path (default).
    _run_case(k1, B=2, S=8, rnn_size=32, mlp_size=32, out_size=1,
              bias_x=True, bias_y=True, compute_dtype=jnp.bfloat16,
              atol=5e-2, rtol=5e-2)
    # Same config through the exact f32 fallback path (tight tolerance).
    _run_case(k1, B=2, S=8, rnn_size=32, mlp_size=32, out_size=1,
              bias_x=True, bias_y=True, compute_dtype=jnp.float32,
              atol=1e-4, rtol=1e-4)
    # Label-scorer-like config (out_size>1, mixed bias flags) -> exercises the
    # o-chunked weight layout and the per-chunk output block.
    _run_case(k2, B=2, S=20, rnn_size=48, mlp_size=24, out_size=3,
              bias_x=True, bias_y=False, compute_dtype=jnp.bfloat16,
              atol=5e-2, rtol=5e-2)

    print("KERNEL_OK")
</pallas_src>

<mosaic_0001>
module attributes {stable_mosaic.version = 11 : i64} {
  func.func @kernel(%arg0: i32, %arg1: i32, %arg2: i32, %arg3: memref<1x128x128xbf16, #tpu.memory_space<vmem>>, %arg4: memref<128x128xbf16, #tpu.memory_space<vmem>>, %arg5: memref<1x128xf32, #tpu.memory_space<vmem>>, %arg6: memref<128x128xbf16, #tpu.memory_space<vmem>>, %arg7: memref<1x128xf32, #tpu.memory_space<vmem>>, %arg8: memref<128x128xbf16, #tpu.memory_space<vmem>>, %arg9: memref<1x1x16x128xf32, #tpu.memory_space<vmem>>, %arg10: memref<16x128xbf16, #tpu.memory_space<vmem>>, %arg11: memref<128x128xbf16, #tpu.memory_space<vmem>>) attributes {dimension_semantics = [#tpu.dimension_semantics<parallel>, #tpu.dimension_semantics<arbitrary>, #tpu.dimension_semantics<arbitrary>], iteration_bounds = array<i64: 2, 1, 1>, scalar_prefetch = 0 : i64, scratch_operands = 2 : i64, tpu.core_type = #tpu.core_type<tc>, window_params = [{transform_indices = @transform_0, window_bounds = array<i64: 1, 128, 128>}, {pipeline_mode = #tpu.pipeline_mode<synchronous>, transform_indices = @transform_1, window_bounds = array<i64: 128, 128>}, {pipeline_mode = #tpu.pipeline_mode<synchronous>, transform_indices = @transform_2, window_bounds = array<i64: 1, 128>}, {pipeline_mode = #tpu.pipeline_mode<synchronous>, transform_indices = @transform_3, window_bounds = array<i64: 128, 128>}, {pipeline_mode = #tpu.pipeline_mode<synchronous>, transform_indices = @transform_4, window_bounds = array<i64: 1, 128>}, {transform_indices = @transform_5, window_bounds = array<i64: 128, 128>}, {transform_indices = @transform_6, window_bounds = array<i64: 1, 1, 16, 128>}]} {
    %c0_i32 = arith.constant 0 : i32
    %0 = arith.cmpi eq, %arg1, %c0_i32 : i32
    %c0_i32_0 = arith.constant 0 : i32
    %1 = arith.cmpi eq, %arg2, %c0_i32_0 : i32
    %2 = arith.andi %0, %1 : i1
    %3 = arith.extui %2 : i1 to i32
    %c0_i32_1 = arith.constant 0 : i32
    %4 = arith.cmpi ne, %3, %c0_i32_1 : i32
    scf.if %4 {
      %c0_14 = arith.constant 0 : index
      %c0_15 = arith.constant 0 : index
      %c0_16 = arith.constant 0 : index
      %17 = vector.load %arg3[%c0_14, %c0_15, %c0_16] : memref<1x128x128xbf16, #tpu.memory_space<vmem>>, vector<1x128x128xbf16>
      %18 = vector.shape_cast %17 : vector<1x128x128xbf16> to vector<128x128xbf16>
      %c0_17 = arith.constant 0 : index
      %c0_18 = arith.constant 0 : index
      %19 = vector.load %arg6[%c0_17, %c0_18] : memref<128x128xbf16, #tpu.memory_space<vmem>>, vector<128x128xbf16>
      %cst_19 = arith.constant dense<0.000000e+00> : vector<128x128xf32>
      %20 = tpu.matmul %18, %19, %cst_19 {dimension_numbers = #tpu.dot_dimension_numbers<[1], [0], [0], [1], [0, 0, 1, 1], [], []>} : vector<128x128xbf16>, vector<128x128xbf16>, vector<128x128xf32> -> vector<128x128xf32>
      %c0_20 = arith.constant 0 : index
      %c0_21 = arith.constant 0 : index
      %21 = vector.load %arg7[%c0_20, %c0_21] : memref<1x128xf32, #tpu.memory_space<vmem>>, vector<1x128xf32>
      %22 = vector.broadcast %21 : vector<1x128xf32> to vector<128x128xf32>
      %23 = arith.addf %20, %22 : vector<128x128xf32>
      %cst_22 = arith.constant 0.000000e+00 : f32
      %24 = vector.broadcast %cst_22 : f32 to vector<128x128xf32>
      %25 = arith.maximumf %23, %24 : vector<128x128xf32>
      %26 = arith.truncf %25 : vector<128x128xf32> to vector<128x128xbf16>
      %c0_23 = arith.constant 0 : index
      %c0_24 = arith.constant 0 : index
      %27 = vector.load %arg11[%c0_23, %c0_24] : memref<128x128xbf16, #tpu.memory_space<vmem>>, vector<128x128xbf16>
      tpu.vector_store %arg11[%c0_23, %c0_24], %26 {strides = array<i32>} : memref<128x128xbf16, #tpu.memory_space<vmem>>, vector<128x128xbf16>,
    } else {
    }
    %c0_i32_2 = arith.constant 0 : i32
    %5 = arith.cmpi eq, %arg2, %c0_i32_2 : i32
    %6 = arith.extui %5 : i1 to i32
    %c0_i32_3 = arith.constant 0 : i32
    %7 = arith.cmpi ne, %6, %c0_i32_3 : i32
    scf.if %7 {
      %c0_14 = arith.constant 0 : index
      %c0_15 = arith.constant 0 : index
      %c0_16 = arith.constant 0 : index
      %17 = vector.load %arg3[%c0_14, %c0_15, %c0_16] : memref<1x128x128xbf16, #tpu.memory_space<vmem>>, vector<1x16x128xbf16>
      %18 = vector.shape_cast %17 : vector<1x16x128xbf16> to vector<16x128xbf16>
      %c0_17 = arith.constant 0 : index
      %c0_18 = arith.constant 0 : index
      %19 = vector.load %arg4[%c0_17, %c0_18] : memref<128x128xbf16, #tpu.memory_space<vmem>>, vector<128x128xbf16>
      %cst_19 = arith.constant dense<0.000000e+00> : vector<16x128xf32>
      %20 = tpu.matmul %18, %19, %cst_19 {dimension_numbers = #tpu.dot_dimension_numbers<[1], [0], [0], [1], [0, 0, 1, 1], [], []>} : vector<16x128xbf16>, vector<128x128xbf16>, vector<16x128xf32> -> vector<16x128xf32>
      %c0_20 = arith.constant 0 : index
      %c0_21 = arith.constant 0 : index
      %21 = vector.load %arg5[%c0_20, %c0_21] : memref<1x128xf32, #tpu.memory_space<vmem>>, vector<1x128xf32>
      %22 = vector.broadcast %21 : vector<1x128xf32> to vector<16x128xf32>
      %23 = arith.addf %20, %22 : vector<16x128xf32>
      %cst_22 = arith.constant 0.000000e+00 : f32
      %24 = vector.broadcast %cst_22 : f32 to vector<16x128xf32>
      %25 = arith.maximumf %23, %24 : vector<16x128xf32>
      %26 = arith.truncf %25 : vector<16x128xf32> to vector<16x128xbf16>
      %c0_23 = arith.constant 0 : index
      %c0_24 = arith.constant 0 : index
      %27 = vector.load %arg10[%c0_23, %c0_24] : memref<16x128xbf16, #tpu.memory_space<vmem>>, vector<16x128xbf16>
      tpu.vector_store %arg10[%c0_23, %c0_24], %26 {strides = array<i32>} : memref<16x128xbf16, #tpu.memory_space<vmem>>, vector<16x128xbf16>,
    } else {
    }
    %c0 = arith.constant 0 : index
    %c0_4 = arith.constant 0 : index
    %8 = vector.load %arg10[%c0, %c0_4] : memref<16x128xbf16, #tpu.memory_space<vmem>>, vector<16x128xbf16>
    %c0_5 = arith.constant 0 : index
    %c0_6 = arith.constant 0 : index
    %9 = vector.load %arg8[%c0_5, %c0_6] : memref<128x128xbf16, #tpu.memory_space<vmem>>, vector<128x128xbf16>
    %cst = arith.constant dense<0.000000e+00> : vector<16x128xf32>
    %10 = tpu.matmul %8, %9, %cst {dimension_numbers = #tpu.dot_dimension_numbers<[1], [0], [0], [1], [0, 0, 1, 1], [], []>} : vector<16x128xbf16>, vector<128x128xbf16>, vector<16x128xf32> -> vector<16x128xf32>
    %11 = arith.truncf %10 : vector<16x128xf32> to vector<16x128xbf16>
    %c0_7 = arith.constant 0 : index
    %c0_8 = arith.constant 0 : index
    %12 = vector.load %arg11[%c0_7, %c0_8] : memref<128x128xbf16, #tpu.memory_space<vmem>>, vector<128x128xbf16>
    %cst_9 = arith.constant dense<0.000000e+00> : vector<16x128xf32>
    %13 = tpu.matmul %11, %12, %cst_9 {dimension_numbers = #tpu.dot_dimension_numbers<[1], [1], [0], [0], [0, 0, 1, 0], [], []>} : vector<16x128xbf16>, vector<128x128xbf16>, vector<16x128xf32> -> vector<16x128xf32>
    %c0_10 = arith.constant 0 : index
    %c0_11 = arith.constant 0 : index
    %c0_12 = arith.constant 0 : index
    %c0_13 = arith.constant 0 : index
    %14 = vector.load %arg9[%c0_10, %c0_11, %c0_12, %c0_13] : memref<1x1x16x128xf32, #tpu.memory_space<vmem>>, vector<1x1x16x128xf32>
    %15 = vector.shape_cast %14 : vector<1x1x16x128xf32> to vector<16x128xf32>
    %16 = vector.shape_cast %13 : vector<16x128xf32> to vector<1x1x16x128xf32>
    tpu.vector_store %arg9[%c0_10, %c0_11, %c0_12, %c0_13], %16 {strides = array<i32>} : memref<1x1x16x128xf32, #tpu.memory_space<vmem>>, vector<1x1x16x128xf32>,
    return
  }
  func.func @transform_0(%arg0: i32, %arg1: i32, %arg2: i32) -> (i32, i32, i32) {
    %c0_i32 = arith.constant 0 : i32
    %c0_i32_0 = arith.constant 0 : i32
    %c0_i32_1 = arith.constant 0 : i32
    return %arg0, %c0_i32, %c0_i32_0 : i32, i32, i32
  }
  func.func @transform_1(%arg0: i32, %arg1: i32, %arg2: i32) -> (i32, i32) {
    %c0_i32 = arith.constant 0 : i32
    %c0_i32_0 = arith.constant 0 : i32
    %c0_i32_1 = arith.constant 0 : i32
    return %c0_i32, %c0_i32_0 : i32, i32
  }
  func.func @transform_2(%arg0: i32, %arg1: i32, %arg2: i32) -> (i32, i32) {
    %c0_i32 = arith.constant 0 : i32
    %c0_i32_0 = arith.constant 0 : i32
    %c0_i32_1 = arith.constant 0 : i32
    return %c0_i32, %c0_i32_0 : i32, i32
  }
  func.func @transform_3(%arg0: i32, %arg1: i32, %arg2: i32) -> (i32, i32) {
    %c0_i32 = arith.constant 0 : i32
    %c0_i32_0 = arith.constant 0 : i32
    %c0_i32_1 = arith.constant 0 : i32
    return %c0_i32, %c0_i32_0 : i32, i32
  }
  func.func @transform_4(%arg0: i32, %arg1: i32, %arg2: i32) -> (i32, i32) {
    %c0_i32 = arith.constant 0 : i32
    %c0_i32_0 = arith.constant 0 : i32
    %c0_i32_1 = arith.constant 0 : i32
    return %c0_i32, %c0_i32_0 : i32, i32
  }
  func.func @transform_5(%arg0: i32, %arg1: i32, %arg2: i32) -> (i32, i32) {
    %c0_i32 = arith.constant 0 : i32
    %c0_i32_0 = arith.constant 0 : i32
    return %c0_i32, %arg2 : i32, i32
  }
  func.func @transform_6(%arg0: i32, %arg1: i32, %arg2: i32) -> (i32, i32, i32, i32) {
    %c0_i32 = arith.constant 0 : i32
    %c0_i32_0 = arith.constant 0 : i32
    return %arg0, %arg2, %arg1, %c0_i32 : i32, i32, i32, i32
  }
}

</mosaic_0001>

<bundles_post_ra>
// kernel: tpu_custom_call.1
= control target key start
LH: loop header
LB: loop body
LE: loop exit
PB: predicated region body
PF: predicated region fallthrough
CT: control target
= control target key end

     0   :  { %s1956_s0 = inlined_call_operand.hbm [shape: bf16[2,128,128], index: 0, kind: input, shape index: {}]   ;;  %s1957_s1 = inlined_call_operand.hbm [shape: bf16[128,128], index: 1, kind: input, shape index: {}]   ;;  %s1958_s2 = inlined_call_operand.vmem [shape: f32[1,128], index: 2, kind: input, shape index: {}]   ;;  %s1959_s3 = inlined_call_operand.hbm [shape: bf16[128,128], index: 3, kind: input, shape index: {}]   ;;  %s1960_s4 = inlined_call_operand.vmem [shape: f32[1,128], index: 4, kind: input, shape index: {}]   ;;  %s1961_s5 = inlined_call_operand.hbm [shape: bf16[128,128], index: 5, kind: input, shape index: {}]   ;;  %s1962_s6 = inlined_call_operand.hbm [shape: f32[2,1,16,128], index: 6, kind: output, shape index: {}]  }
   0x1   :  { %1970 = sst [smem:[#allocation19_spill]] %s1962_s6 }
   0x2   :  { %11 = vsyncpa [#allocation5], 0 }
   0x3   :  { %13 = vsyncpa [#allocation5 + $0x1], 0 }
   0x4   :  { %14 = vsyncpa [#allocation8], 0 }
   0x5   :  { %15 = vsyncpa [#allocation11], 0 }
   0x6   :  { %16 = vsyncpa [#allocation6], 0 }
   0x7   :  { %18 = vsyncpa [#allocation6 + $0x1], 0  ;;  %s1616_s21 = smov 0   ;;  %s1618_s22 = smov 0  }
   0x8   :  { %s1620_s23 = smov 0   ;;  %s1622_s24 = smov 0  }
   0x9   :  { %s1624_s25 = smov 0   ;;  %s1626_s26 = smov 0  }
   0xa LB: > { %1971 = sst [smem:[#allocation17_spill]] %s1548_s21  ;;  %s1039_s27 = sadd.s32 4294967295, %s1568_s26   ;;  %s1568_s26 = sphi %s1626_s26, %s24_s26   ;;  %s1564_s25 = sphi %s1624_s25, %s1995_s25   ;;  %s1560_s24 = sphi %s1622_s24, %s1994_s24   ;;  %s1556_s23 = sphi %s1620_s23, %s1993_s23   ;;  %s1552_s22 = sphi %s1618_s22, %s1992_s22   ;;  %s1548_s21 = sphi %s1616_s21, %s1991_s21  }
   0xb   : > { %s1040_s28 = sadd.s32 4294967294, %s1568_s26   ;;  %p63_p0 = scmp.ne.s32.totalorder %s1552_s22, %s1548_s21 }
   0xc   : > { %p1650_p1 = scmp.eq.s32.totalorder %s1039_s27, 0  ;;  %p1654_p2 = scmp.eq.s32.totalorder %s1039_s27, 1 }
   0xd   : > { %p207_p3 = scmp.eq.s32.totalorder %s1040_s28, 1  ;;  %p1041_p5 = scmp.ge.s32.totalorder %s1568_s26, 1 }
   0xe   : > { %s1972_s29 = scalar_select %p1650_p1, 1, 0 }
   0xf   : > { %s1973_s30 = scalar_select %p1654_p2, 1, 0 }
  0x10   : > { %p1660_p4 = por %p1650_p1, %p63_p0  ;;  %p1665_p6 = por %p207_p3, %p63_p0 }
  0x11   : > { %p214_p7 = scmp.lt.s32.totalorder %s1568_s26, 3  ;;  %s1570_s10 = smov [#allocation7]  }
  0x12   : > { %s1974_s7 = scalar_select %p1660_p4, 1, 0 }
  0x13   : > { %s1975_s8 = scalar_select %p1665_p6, 1, 0 }
  0x14   : > { %p1670_p8 = pnand %p1041_p5, %p214_p7  ;;  %s226_s11 = sshll.u32 %s1570_s10, 4  ;;  %s1674_s11 = int_to_ptr.vmem [resolvable:$true] %s226_s11 }
  0x15   : > { %1976 = sst [smem:[#allocation18_spill]] %s1975_s8  ;;  %s1571_s13 = smov [#allocation9]  }
  0x16   : > { %s1977_s9 = scalar_select %p1670_p8, 1, 0 }
  0x17   : > { %p1248_p9 = pneg %p1670_p8  ;;  %s242_s14 = sshll.u32 %s1571_s13, 4  ;;  %s1685_s14 = int_to_ptr.vmem [resolvable:$true] %s242_s14 }
  0x18   : > { %s1572_s15 = smov [#allocation10]   ;;  %s1364_s19 = scalar_lea.hbm %s1957_s1, 1024 }
  0x19   : > { %p1681_p11 = pnand %p1248_p9, %p1650_p1  ;;  %s1687_s16 = sshll.u32 %s1572_s15, 4  ;;  %s261_s16 = int_to_ptr.vmem [resolvable:$true] %s1687_s16 }
  0x1a   : > { %p1365_p12 = scmp.ne.s32.totalorder %s1957_s1, %s1364_s19  ;;  %p1371_p5 = scmp.lt.u32.totalorder %s1364_s19, %s1957_s1 }
  0x1b   : > { %p1697_p13 = pneg %p1681_p11 }
  0x1d   : > { %p1367_p0 = pnand %p1697_p13, %p1365_p12 }
  0x1f   : > { %p1368_p3 = pneg %p1367_p0 }
  0x21   : > { %p1373_p7 = pnand %p1371_p5, %p1368_p3 }
  0x23   : > { %1376 = shalt.err (!%p1373_p7)
}
  0x24   : > { %s1377_s15 = scalar_lea.vmem %s1674_s11, 1024  ;;  %p1385_p1 = scmp.lt.s32.totalorder %s1674_s11, %s1674_s11 }
  0x25   : > { %p1378_p9 = scmp.ne.s32.totalorder %s1674_s11, %s1377_s15  ;;  %p1386_p4 = scmp.lt.s32.totalorder %s1377_s15, %s1377_s15 }
  0x27   : > { %p1380_p10 = pnand %p1378_p9, %p1697_p13  ;;  %p1387_p12 = por %p1386_p4, %p1385_p1 }
  0x29   : > { %p1381_p6 = pneg %p1380_p10 }
  0x2b   : > { %p1388_p0 = pnand %p1387_p12, %p1381_p6 }
  0x2d   : > { %1391 = shalt.err (!%p1388_p0)
}
  0x2e   : > { %s1573_s17 = smov 64   ;;  %s1574_s18 = smov 4  }
  0x2f   : > { %1251 = dma.hbm_to_vmem [thread:$0]  (!%p1681_p11), %s1957_s1, 1024, %s1674_s11, [#allocation8], %s1573_s17, %s1573_s17, %s1574_s18  }
  0x30   : > { %s1392_s13 = scalar_lea.hbm %s1959_s3, 1024 }
  0x31   : > { %p1393_p1 = scmp.ne.s32.totalorder %s1959_s3, %s1392_s13  ;;  %p1399_p10 = scmp.lt.u32.totalorder %s1392_s13, %s1959_s3 }
  0x33   : > { %p1395_p4 = pnand %p1393_p1, %p1697_p13 }
  0x35   : > { %p1396_p6 = pneg %p1395_p4 }
  0x37   : > { %p1401_p3 = pnand %p1399_p10, %p1396_p6 }
  0x39   : > { %1404 = shalt.err (!%p1401_p3)
}
  0x3a   : > { %s1405_s11 = scalar_lea.vmem %s1685_s14, 1024  ;;  %p1413_p12 = scmp.lt.s32.totalorder %s1685_s14, %s1685_s14 }
  0x3b   : > { %p1406_p5 = scmp.ne.s32.totalorder %s1685_s14, %s1405_s11  ;;  %p1414_p0 = scmp.lt.s32.totalorder %s1405_s11, %s1405_s11 }
  0x3d   : > { %p1408_p7 = pnand %p1406_p5, %p1697_p13  ;;  %p1415_p1 = por %p1414_p0, %p1413_p12 }
  0x3f   : > { %p1409_p9 = pneg %p1408_p7 }
  0x41   : > { %p1416_p4 = pnand %p1415_p1, %p1409_p9 }
  0x43   : > { %1419 = shalt.err (!%p1416_p4)
}
  0x44   : > { %1254 = dma.hbm_to_vmem [thread:$0]  (!%p1681_p11), %s1959_s3, 1024, %s1685_s14, [#allocation8], %s1573_s17, %s1573_s17, %s1574_s18  }
  0x45   : > { %s1420_s20 = scalar_lea.hbm %s1961_s5, 1024 }
  0x46   : > { %p1421_p6 = scmp.ne.s32.totalorder %s1961_s5, %s1420_s20  ;;  %p1427_p5 = scmp.lt.u32.totalorder %s1420_s20, %s1961_s5 }
  0x48   : > { %p1423_p10 = pnand %p1421_p6, %p1697_p13 }
  0x4a   : > { %p1424_p3 = pneg %p1423_p10 }
  0x4c   : > { %p1429_p7 = pnand %p1427_p5, %p1424_p3 }
  0x4e   : > { %1432 = shalt.err (!%p1429_p7)
}
  0x4f   : > { %s1433_s11 = scalar_lea.vmem %s261_s16, 1024  ;;  %p1441_p1 = scmp.lt.s32.totalorder %s261_s16, %s261_s16 }
  0x50   : > { %p1434_p9 = scmp.ne.s32.totalorder %s261_s16, %s1433_s11  ;;  %p1442_p4 = scmp.lt.s32.totalorder %s1433_s11, %s1433_s11 }
  0x52   : > { %p1436_p12 = pnand %p1434_p9, %p1697_p13  ;;  %p1443_p8 = por %p1442_p4, %p1441_p1 }
  0x54   : > { %p1437_p0 = pneg %p1436_p12 }
  0x56   : > { %p1444_p2 = pnand %p1443_p8, %p1437_p0 }
  0x58   : > { %1447 = shalt.err (!%p1444_p2)
}
  0x59   : > { %1257 = dma.hbm_to_vmem [thread:$0]  (!%p1681_p11), %s1961_s5, 1024, %s261_s16, [#allocation11], %s1573_s17, %s1573_s17, %s1574_s18  }
  0x5a   : > { %s50_s28 = sadd.s32 1, %s1556_s23  ;;  %s43_s12 = sadd.s32 1, %s1564_s25 }
  0x5b   : > { %p57_p2 = scmp.ne.s32.totalorder %s1556_s23, %s1552_s22  ;;  %p45_p8 = scmp.ge.s32.totalorder %s43_s12, 2 }
  0x5c   : > { %p58_p13 = scmp.eq.s32.totalorder %s1568_s26, 0  ;;  %p1980_p6 = scmp.ne.s32.totalorder %s1973_s30, 0 }
  0x5d   : > { %p1269_p3 = scmp.lt.s32.totalorder %s1568_s26, 2  ;;  %s1997_s12 = smov (%p45_p8, %s43_s12), 0 }
  0x5e   : > { %p1776_p10 = por %p1980_p6, %p57_p2  ;;  %p59_p5 = por %p58_p13, %p57_p2 }
  0x5f   : > { %s274_s8 = sand.u32 1, %s1556_s23   ;;  %s47_s19 = ssub.s32 %s1564_s25, %s1997_s12 }
  0x60   : > { %p48_p7 = scmp.eq.s32.totalorder %s47_s19, 0  ;;  %s1046_s16 = sshll.u32 %s274_s8, 6 }
  0x61   : > { %s1095_s20 = sshll.u32 %s1564_s25, 10  ;;  %s278_s15 = scalar_lea.vmem [#allocation4], %s1046_s16 }
  0x62   : > { %s1788_s27 = scalar_select %p48_p7, %s1556_s23, %s50_s28  }
  0x63   : > { %s1793_s30 = scalar_lea.hbm %s1956_s0, %s1095_s20  ;;  %s285_s11 = sshll.u32 %s278_s15, 4  ;;  %s1795_s11 = int_to_ptr.vmem [resolvable:$true] %s285_s11 }
  0x64   : > { %p1799_p11 = pnand %p1269_p3, %p59_p5  ;;  %s1803_s6 = scalar_lea.sflag [#allocation5], %s274_s8 }
  0x65   : > { %s1448_s28 = scalar_lea.hbm %s1793_s30, 1024  ;;  %s1453_s20 = scalar_lea.hbm %s1956_s0, 2048 }
  0x66   : > { %p1449_p9 = scmp.ne.s32.totalorder %s1793_s30, %s1448_s28  ;;  %p1450_p12 = pneg %p1799_p11 }
  0x67   : > { %p1454_p4 = scmp.lt.u32.totalorder %s1793_s30, %s1956_s0  ;;  %p1455_p2 = scmp.lt.u32.totalorder %s1453_s20, %s1448_s28 }
  0x68   : > { %p1451_p0 = pnand %p1450_p12, %p1449_p9  ;;  %p1457_p13 = scmp.lt.u32.totalorder %s1448_s28, %s1793_s30 }
  0x69   : > { %p1456_p8 = por %p1455_p2, %p1454_p4 }
  0x6a   : > { %p1452_p1 = pneg %p1451_p0 }
  0x6b   : > { %p1458_p6 = por %p1457_p13, %p1456_p8 }
  0x6d   : > { %p1459_p3 = pnand %p1458_p6, %p1452_p1 }
  0x6f   : > { %1462 = shalt.err (!%p1459_p3)
}
  0x70   : > { %s1463_s8 = scalar_lea.vmem %s1795_s11, 1024  ;;  %s1575_s15 = smov [#allocation4]  }
  0x71   : > { %p1464_p5 = scmp.ne.s32.totalorder %s1795_s11, %s1463_s8  ;;  %s1468_s19 = sshll.u32 %s1575_s15, 4  ;;  %s1469_s19 = int_to_ptr.vmem [resolvable:$false] %s1468_s19 }
  0x72   : > { %s1470_s16 = scalar_lea.vmem %s1469_s19, 2048  ;;  %p1471_p0 = scmp.lt.s32.totalorder %s1795_s11, %s1469_s19 }
  0x73   : > { %p1466_p7 = pnand %p1464_p5, %p1450_p12  ;;  %p1472_p4 = scmp.lt.s32.totalorder %s1470_s16, %s1463_s8 }
  0x75   : > { %p1467_p9 = pneg %p1466_p7  ;;  %p1473_p2 = por %p1472_p4, %p1471_p0 }
  0x77   : > { %p1474_p8 = pnand %p1473_p2, %p1467_p9 }
  0x79   : > { %1477 = shalt.err (!%p1474_p8)
}
  0x7a   : > { %1261 = dma.hbm_to_vmem [thread:$0]  (!%p1799_p11), %s1793_s30, 1024, %s1795_s11, %s1803_s6, %s1573_s17, %s1573_s17, %s1574_s18  }
  0x7b   : > { %p1983_p12 = scmp.ne.s32.totalorder %s1977_s9, 0 }
  0x7c   : > { %s1837_s28 = sand.u32 (!%p1983_p12), 1, %s1552_s22   ;;  %p1984_p1 = scmp.ne.s32.totalorder (!%p1983_p12), %s1974_s7, 0 }
  0x7d   : > { %297 = sbr.rel (%p1983_p12) target bundleno = 836 (0x344), region = 44  ;;  %s1050_s20 = sshll.u32 (!%p1983_p12), %s1837_s28, 6 }
  0x7e   : > { %s300_s10 = scalar_lea.sflag (!%p1983_p12), [#allocation5], %s1837_s28  ;;  %s1841_s13 = scalar_lea.vmem (!%p1983_p12), [#allocation4], %s1050_s20 }
  0x84   : > { %1531 = dma.done.wait (%p1984_p1), %s300_s10, 1024  }
  0x85   : > { %1533 = vsyncadd (%p1984_p1), %s300_s10, 4294966272  ;;  %p1985_p11 = scmp.ne.s32.totalorder %s1972_s29, 0 }
  0x87   : > { %1535 = dma.done.wait (%p1985_p11), [#allocation8], 2048  }
  0x88   : > { %1537 = vsyncadd (%p1985_p11), [#allocation8], 4294965248 }
  0x89   : > { %1539 = dma.done.wait (%p1985_p11), [#allocation11], 1024  }
  0x8a   : > { %1541 = vsyncadd (%p1985_p11), [#allocation11], 4294966272  ;;  %v1576_v0 = vmov 0.0   ;;  %vm1577_vm0 = vmmov 0   ;;  %v1331_v1 = vld [vmem:[#allocation7] sm:$0xff]   ;;  %v1332_v2 = vld [vmem:[#allocation7 + $0x8] sm:$0xff]  }
  0x8b   : > { %1172 = vmatprep.subr.bf16.mxu1 %v1576_v0  ;;  %1188 = vmatprep.mubr.msk.bf16.mxu1 %vm1577_vm0, %v1576_v0  ;;  %v1333_v3 = vld [vmem:[#allocation7 + $0x10] sm:$0xff]   ;;  %v1334_v4 = vld [vmem:[#allocation7 + $0x18] sm:$0xff]   ;;  %v1340_v5 = vld [vmem:[#allocation9] sm:$0xff]   ;;  %s1054_s18 = sshll.u32 %s1837_s28, 4  ;;  %s1096_s14 = sshll.u32 %s1560_s24, 8 }
  0x8c   : > { %1173 = vmatpush3.bf16.msra.mxu1 %v1331_v1  ;;  %v1341_v6 = vld [vmem:[#allocation9 + $0x8] sm:$0xff]   ;;  %1140 = vmatprep.subr.bf16.mxu0 %v1340_v5  ;;  %v1342_v7 = vld [vmem:[#allocation9 + $0x10] sm:$0xff]   ;;  %v1335_v8 = vld [vmem:[#allocation7 + $0x20] sm:$0xff]   ;;  %s343_s30 = scalar_lea.vmem [#allocation12], %s1054_s18  ;;  %s1986_s15 = sld [smem:[#allocation19_spill]] }
  0x8d   : > { %1174 = vmatprep.subr.bf16.mxu1 %v1576_v0  ;;  %1141 = vmatpush3.bf16.msra.mxu0 %v1340_v5  ;;  %v1343_v9 = vld [vmem:[#allocation9 + $0x18] sm:$0xff]   ;;  %v1348_v10 = vld [vmem:[%s1841_s13] sm:$0xff]   ;;  %v1336_v11 = vld [vmem:[#allocation7 + $0x28] sm:$0xff]   ;;  %s919_s11 = sshll.u32 %s343_s30, 4  ;;  %s902_s16 = scalar_lea.sflag [#allocation6], %s1837_s28  ;;  %s1902_s11 = int_to_ptr.vmem [resolvable:$true] %s919_s11 }
  0x8e   : > { %1142 = vmatprep.subr.bf16.mxu0 %v1341_v6  ;;  %1156 = vmatprep.mubr.bf16.mxu0 %v1348_v10  ;;  %v1344_v12 = vld [vmem:[#allocation9 + $0x20] sm:$0xff]   ;;  %v1337_v13 = vld [vmem:[#allocation7 + $0x30] sm:$0xff]   ;;  %v1345_v14 = vld [vmem:[#allocation9 + $0x28] sm:$0xff]   ;;  %s1478_s20 = scalar_lea.vmem %s1902_s11, 256  ;;  %s1578_s24 = smov [#allocation12]  }
  0x8f   : > { %v1338_v15 = vld [vmem:[#allocation7 + $0x38] sm:$0xff]   ;;  %v1339_v16 = vld [vmem:[%s1841_s13] sm:$0xff]   ;;  %v1346_v17 = vld [vmem:[#allocation9 + $0x30] sm:$0xff]   ;;  %p1479_p13 = scmp.ne.s32.totalorder %s1902_s11, %s1478_s20  ;;  %s1482_s10 = sshll.u32 %s1578_s24, 4  ;;  %s1483_s10 = int_to_ptr.vmem [resolvable:$false] %s1482_s10 }
  0x90   : > { %1175 = vmatpush3.bf16.msra.mxu1 %v1332_v2  ;;  %v1347_v18 = vld [vmem:[#allocation9 + $0x38] sm:$0xff]   ;;  %v1349_v19 = vld [vmem:[%s1841_s13 + $0x8] sm:$0xff]   ;;  %v1350_v20 = vld [vmem:[%s1841_s13 + $0x10] sm:$0xff]   ;;  %p1485_p5 = scmp.lt.s32.totalorder %s1902_s11, %s1483_s10 }
  0x91   : > { %1176 = vmatprep.subr.bf16.mxu1 %v1576_v0  ;;  %1143 = vmatpush3.bf16.msra.mxu0 %v1341_v6  ;;  %v1355_v21 = vld [vmem:[#allocation10] sm:$0xff]   ;;  %v1357_v22 = vld [vmem:[#allocation10 + $0x8] sm:$0xff]   ;;  %v1351_v23 = vld [vmem:[%s1841_s13 + $0x18] sm:$0xff]   ;;  %p1480_p6 = pnand %p1479_p13, %p1776_p10 }
  0x92   : > { %1144 = vmatprep.subr.bf16.mxu0 %v1342_v7  ;;  %v1352_v24 = vld [vmem:[%s1841_s13 + $0x20] sm:$0xff]   ;;  %v1358_v25 = vld [vmem:[#allocation10 + $0x10] sm:$0xff]   ;;  %v1359_v26 = vld [vmem:[#allocation10 + $0x18] sm:$0xff]   ;;  %s1907_s19 = scalar_lea.hbm %s1986_s15, %s1096_s14 }
  0x93   : > { %v1353_v27 = vld [vmem:[%s1841_s13 + $0x28] sm:$0xff]   ;;  %v1354_v28 = vld [vmem:[%s1841_s13 + $0x30] sm:$0xff]   ;;  %v1360_v29 = vld [vmem:[#allocation10 + $0x20] sm:$0xff]   ;;  %p1481_p3 = pneg %p1480_p6 }
  0x94   : > { %1177 = vmatpush3.bf16.msra.mxu1 %v1333_v3  ;;  %v1361_v30 = vld [vmem:[#allocation10 + $0x28] sm:$0xff]   ;;  %v1356_v31 = vld [vmem:[%s1841_s13 + $0x38] sm:$0xff]   ;;  %v1362_v32 = vld [vmem:[#allocation10 + $0x30] sm:$0xff]   ;;  %s1484_s13 = scalar_lea.vmem %s1483_s10, 512 }
  0x95   : > { %1178 = vmatprep.subr.bf16.mxu1 %v1576_v0  ;;  %1145 = vmatpush3.bf16.msra.mxu0 %v1342_v7  ;;  %v1363_v33 = vld [vmem:[#allocation10 + $0x38] sm:$0xff]   ;;  %v1072_v34 = vld [vmem:[%s1958_s2] ss:$0 sm:$0xff]  ;;  %p1486_p7 = scmp.lt.s32.totalorder %s1484_s13, %s1478_s20 }
  0x96   : > { %1146 = vmatprep.subr.bf16.mxu0 %v1343_v9  ;;  %v1055_v44 = vld [vmem:[%s1960_s4] ss:$0 sm:$0xff] }
  0x97   : > { %p1487_p9 = por %p1486_p7, %p1485_p5 }
  0x98   : > { %1179 = vmatpush3.bf16.msra.mxu1 %v1334_v4 }
  0x99   : > { %1180 = vmatprep.subr.bf16.mxu1 %v1576_v0  ;;  %1147 = vmatpush3.bf16.msra.mxu0 %v1343_v9  ;;  %p1488_p0 = pnand %p1487_p9, %p1481_p3 }
  0x9a   : > { %1148 = vmatprep.subr.bf16.mxu0 %v1344_v12 }
  0x9c   : > { %1181 = vmatpush3.bf16.msra.mxu1 %v1335_v8 }
  0x9d   : > { %1182 = vmatprep.subr.bf16.mxu1 %v1576_v0  ;;  %1149 = vmatpush3.bf16.msra.mxu0 %v1344_v12 }
  0x9e   : > { %1150 = vmatprep.subr.bf16.mxu0 %v1345_v14 }
  0xa0   : > { %1183 = vmatpush3.bf16.msra.mxu1 %v1336_v11 }
  0xa1   : > { %1184 = vmatprep.subr.bf16.mxu1 %v1576_v0  ;;  %1151 = vmatpush3.bf16.msra.mxu0 %v1345_v14 }
  0xa2   : > { %1152 = vmatprep.subr.bf16.mxu0 %v1346_v17 }
  0xa4   : > { %1185 = vmatpush3.bf16.msra.mxu1 %v1337_v13 }
  0xa5   : > { %1186 = vmatprep.subr.bf16.mxu1 %v1576_v0  ;;  %1153 = vmatpush3.bf16.msra.mxu0 %v1346_v17 }
  0xa6   : > { %1154 = vmatprep.subr.bf16.mxu0 %v1347_v18 }
  0xa8   : > { %1187 = vmatpush3.bf16.msra.mxu1 %v1338_v15 }
  0xa9   : > { %1212 = vmatprep.subr.bf16.mxu1 %v1576_v0  ;;  %1155 = vmatpush3.bf16.msra.mxu0 %v1347_v18 }
  0xaa   : > { %1192 = vmatprep.subr.bf16.mxu0 %v1576_v0 }
  0xab   : > { %1189 = vmatmul.mubr.bf16.vlgmr.msra.gmra.mrb[0].mxu1 %v1339_v16 }
  0xac   : > { %1228 = vmatprep.mubr.msk.bf16.mxu1 %vm1577_vm0, %v1576_v0  ;;  %1157 = vmatmul.mubr.bf16.vlgmr.msra.gmra.mrb[0].mxu0 %v1349_v19 }
  0xad   : > { %1160 = vmatprep.mubr.bf16.mxu0 %v1350_v20  ;;  %1193 = vmatpush3.bf16.msra.mxu0 %v1355_v21 }
  0xae   : > { %1194 = vmatprep.subr.bf16.mxu0 %v1576_v0 }
  0xb1   : > { %1195 = vmatpush3.bf16.msra.mxu0 %v1357_v22 }
  0xb2   : > { %1196 = vmatprep.subr.bf16.mxu0 %v1576_v0 }
  0xb4   : > { %1161 = vmatmul.mubr.bf16.gmra.mrb[4].mxu0 %v1351_v23 }
  0xb5   : > { %1164 = vmatprep.mubr.bf16.mxu0 %v1352_v24  ;;  %1197 = vmatpush3.bf16.msra.mxu0 %v1358_v25 }
  0xb6   : > { %1198 = vmatprep.subr.bf16.mxu0 %v1576_v0 }
  0xb9   : > { %1199 = vmatpush3.bf16.msra.mxu0 %v1359_v26 }
  0xba   : > { %1200 = vmatprep.subr.bf16.mxu0 %v1576_v0 }
  0xbc   : > { %1165 = vmatmul.mubr.bf16.gmra.mrb[8].mxu0 %v1353_v27 }
  0xbd   : > { %1168 = vmatprep.mubr.bf16.mxu0 %v1354_v28  ;;  %1201 = vmatpush3.bf16.msra.mxu0 %v1360_v29 }
  0xbe   : > { %1202 = vmatprep.subr.bf16.mxu0 %v1576_v0 }
  0xc1   : > { %1203 = vmatpush3.bf16.msra.mxu0 %v1361_v30 }
  0xc2   : > { %1204 = vmatprep.subr.bf16.mxu0 %v1576_v0 }
  0xc4   : > { %1169 = vmatmul.mubr.bf16.gmra.mrb[12].mxu0 %v1356_v31 }
  0xc5   : > { %1208 = vmatprep.mubr.msk.bf16.mxu0 %vm1577_vm0, %v1576_v0  ;;  %1205 = vmatpush3.bf16.msra.mxu0 %v1362_v32 }
  0xc6   : > { %1206 = vmatprep.subr.bf16.mxu0 %v1576_v0 }
  0xc9   : > { %1207 = vmatpush3.bf16.msra.mxu0 %v1363_v33 }
 0x17e   : > { %v732_v35 = vpop.f32.mrb[0].mxu1 }
 0x17f   : > { %v733_v36 = vadd.f32 %v1072_v34, %v732_v35  ;;  %v1190_v37 = vpop.f32.mrb[1].mxu1  ;;  %v1158_v45 = vpop.f32.mrb[0].mxu0 }
 0x180   : > { %v735_v38 = vpop.f32.mrb[2].mxu1  ;;  %v530_v46 = vadd.f32 %v1158_v45, %v1055_v44  ;;  %v521_v47 = vpop.f32.mrb[1].mxu0 }
 0x181   : > { %v736_v39 = vadd.f32 %v1072_v34, %v735_v38  ;;  %v1191_v40 = vpop.f32.mrb[3].mxu1  ;;  %v739_v41 = vmax.f32 %v733_v36, 0.0  ;;  %v522_v48 = vadd.f32 %v1055_v44, %v521_v47  ;;  %v1159_v49 = vpop.f32.mrb[2].mxu0 }
 0x182   : > { %v586_v50 = vmax.f32 %v530_v46, 0.0  ;;  %v533_v51 = vadd.f32 %v1159_v49, %v1055_v44  ;;  %v524_v52 = vpop.f32.mrb[3].mxu0 }
 0x183   : > { %v740_v42 = vmax.f32 %v736_v39, 0.0  ;;  %v584_v53 = vmax.f32 %v522_v48, 0.0  ;;  %v525_v54 = vadd.f32 %v1055_v44, %v524_v52 }
 0x184   : > { %v587_v55 = vmax.f32 %v533_v51, 0.0 }
 0x185   : > { %v741_v43 = vpack.c.bf16 %v740_v42, %v739_v41  ;;  %v585_v56 = vmax.f32 %v525_v54, 0.0 }
 0x186   : > { %v601_v57 = vpack.c.bf16 %v587_v55, %v586_v50 }
 0x187   : > { %1209 = vmatmul.mubr.bf16.vlgmr.msra.gmra.mrb[16].mxu0 %v741_v43  ;;  %v600_v58 = vpack.c.bf16 %v585_v56, %v584_v53  ;;  %v1162_v59 = vpop.f32.mrb[4].mxu0 }
 0x188   : > { %v546_v60 = vadd.f32 %v1162_v59, %v1055_v44  ;;  %v537_v61 = vpop.f32.mrb[5].mxu0 }
 0x189   : > { %1213 = vmatpush3.bf16.xpose.msra.mxu1 %v600_v58  ;;  %v538_v62 = vadd.f32 %v1055_v44, %v537_v61  ;;  %v1163_v63 = vpop.f32.mrb[6].mxu0 }
 0x18a   : > { %v590_v1 = vmax.f32 %v546_v60, 0.0  ;;  %1214 = vmatprep.subr.bf16.mxu1 %v1576_v0  ;;  %v549_v2 = vadd.f32 %v1163_v63, %v1055_v44  ;;  %v540_v3 = vpop.f32.mrb[7].mxu0 }
 0x18b   : > { %v588_v4 = vmax.f32 %v538_v62, 0.0  ;;  %v541_v5 = vadd.f32 %v1055_v44, %v540_v3 }
 0x18c   : > { %v591_v6 = vmax.f32 %v549_v2, 0.0 }
 0x18d   : > { %v589_v7 = vmax.f32 %v541_v5, 0.0 }
 0x18e   : > { %v603_v8 = vpack.c.bf16 %v591_v6, %v590_v1 }
 0x18f   : > { %v602_v9 = vpack.c.bf16 %v589_v7, %v588_v4  ;;  %v1166_v10 = vpop.f32.mrb[8].mxu0 }
 0x190   : > { %v562_v11 = vadd.f32 %v1166_v10, %v1055_v44  ;;  %v553_v12 = vpop.f32.mrb[9].mxu0 }
 0x191   : > { %1215 = vmatpush3.bf16.xpose.msra.mxu1 %v601_v57  ;;  %v554_v13 = vadd.f32 %v1055_v44, %v553_v12  ;;  %v1167_v14 = vpop.f32.mrb[10].mxu0 }
 0x192   : > { %1216 = vmatprep.subr.bf16.mxu1 %v1576_v0  ;;  %v594_v15 = vmax.f32 %v562_v11, 0.0  ;;  %v565_v16 = vadd.f32 %v1167_v14, %v1055_v44  ;;  %v556_v17 = vpop.f32.mrb[11].mxu0 }
 0x193   : > { %v592_v18 = vmax.f32 %v554_v13, 0.0  ;;  %v557_v19 = vadd.f32 %v1055_v44, %v556_v17 }
 0x194   : > { %v595_v20 = vmax.f32 %v565_v16, 0.0 }
 0x195   : > { %v593_v21 = vmax.f32 %v557_v19, 0.0 }
 0x196   : > { %v605_v22 = vpack.c.bf16 %v595_v20, %v594_v15 }
 0x197   : > { %v604_v23 = vpack.c.bf16 %v593_v21, %v592_v18  ;;  %v1170_v24 = vpop.f32.mrb[12].mxu0 }
 0x198   : > { %v578_v25 = vadd.f32 %v1170_v24, %v1055_v44  ;;  %v569_v26 = vpop.f32.mrb[13].mxu0 }
 0x199   : > { %1217 = vmatpush3.bf16.xpose.msra.mxu1 %v602_v9  ;;  %v570_v27 = vadd.f32 %v1055_v44, %v569_v26  ;;  %v1171_v28 = vpop.f32.mrb[14].mxu0 }
 0x19a   : > { %1218 = vmatprep.subr.bf16.mxu1 %v1576_v0  ;;  %v598_v29 = vmax.f32 %v578_v25, 0.0  ;;  %v581_v30 = vadd.f32 %v1171_v28, %v1055_v44  ;;  %v572_v31 = vpop.f32.mrb[15].mxu0 }
 0x19b   : > { %v596_v32 = vmax.f32 %v570_v27, 0.0  ;;  %v573_v33 = vadd.f32 %v1055_v44, %v572_v31 }
 0x19c   : > { %v599_v34 = vmax.f32 %v581_v30, 0.0 }
 0x19d   : > { %v597_v35 = vmax.f32 %v573_v33, 0.0 }
 0x19e   : > { %v607_v36 = vpack.c.bf16 %v599_v34, %v598_v29 }
 0x19f   : > { %v606_v37 = vpack.c.bf16 %v597_v35, %v596_v32 }
 0x1a1   : > { %1219 = vmatpush3.bf16.xpose.msra.mxu1 %v603_v8 }
 0x1a2   : > { %1220 = vmatprep.subr.bf16.mxu1 %v1576_v0 }
 0x1a9   : > { %1221 = vmatpush3.bf16.xpose.msra.mxu1 %v604_v23 }
 0x1aa   : > { %1222 = vmatprep.subr.bf16.mxu1 %v1576_v0 }
 0x1b1   : > { %1223 = vmatpush3.bf16.xpose.msra.mxu1 %v605_v22 }
 0x1b2   : > { %1224 = vmatprep.subr.bf16.mxu1 %v1576_v0 }
 0x1b9   : > { %1225 = vmatpush3.bf16.xpose.msra.mxu1 %v606_v37 }
 0x1ba   : > { %1226 = vmatprep.subr.bf16.mxu1 %v1576_v0 }
 0x1c1   : > { %1227 = vmatpush3.bf16.xpose.msra.mxu1 %v607_v36 }
 0x25a   : > { %v842_v38 = vpop.f32.mrb[16].mxu0 }
 0x25b   : > { %v1210_v39 = vpop.f32.mrb[17].mxu0 }
 0x25c   : > { %v845_v40 = vpop.f32.mrb[18].mxu0 }
 0x25d   : > { %v849_v41 = vpack.c.bf16 %v845_v40, %v842_v38  ;;  %v1211_v42 = vpop.f32.mrb[19].mxu0 }
 0x25f   : > { %1229 = vmatmul.mubr.bf16.vlgmr.msra.gmra.mrb[4].mxu1 %v849_v41 }
 0x332   : > { %v892_v43 = vpop.f32.mrb[4].mxu1 }
 0x333   : > { %899 = vst [vmem:[%s343_s30] sm:$0xff] %v892_v43  ;;  %v1230_v0 = vpop.f32.mrb[5].mxu1 }
 0x334   : > { %v895_v44 = vpop.f32.mrb[6].mxu1 }
 0x335   : > { %900 = vst [vmem:[%s343_s30 + $0x8] sm:$0xff] %v895_v44  ;;  %v1231_v45 = vpop.f32.mrb[7].mxu1 }
 0x336   : > { %1491 = shalt.err (!%p1488_p0)
}
 0x337   : > { %s1492_s29 = scalar_lea.hbm %s1907_s19, 256  ;;  %s1496_s17 = scalar_lea.hbm %s1986_s15, 512 }
 0x338   : > { %p1493_p4 = scmp.ne.s32.totalorder %s1907_s19, %s1492_s29  ;;  %p1497_p12 = scmp.lt.u32.totalorder %s1907_s19, %s1986_s15 }
 0x339   : > { %p1498_p1 = scmp.lt.u32.totalorder %s1496_s17, %s1492_s29  ;;  %p1500_p13 = scmp.lt.u32.totalorder %s1492_s29, %s1907_s19 }
 0x33a   : > { %p1494_p2 = pnand %p1493_p4, %p1776_p10 }
 0x33b   : > { %p1499_p11 = por %p1498_p1, %p1497_p12 }
 0x33c   : > { %p1495_p8 = pneg %p1494_p2 }
 0x33d   : > { %p1501_p6 = por %p1500_p13, %p1499_p11 }
 0x33f   : > { %p1502_p3 = pnand %p1501_p6, %p1495_p8 }
 0x341   : > { %1505 = shalt.err (!%p1502_p3)
}
 0x342   : > { %s1579_s14 = smov 128   ;;  %s1580_s6 = smov 8  }
 0x343   : > { %1246 = dma.vmem_to_hbm [thread:$0]  (%p1776_p10), %s1902_s11, 256, %s1907_s19, %s902_s16, %s1579_s14, %s1579_s14, %s1580_s6  }
 0x344 PF: > { %s1987_s8 = sld [smem:[#allocation17_spill]]  ;;  %s1988_s20 = sld [smem:[#allocation18_spill]] }
 0x345   : > { %p1990_p7 = scmp.ge.s32.totalorder %s1568_s26, 2 }
 0x34a   : > { %s934_s24 = sand.u32 1, %s1987_s8   ;;  %p1989_p5 = scmp.ne.s32.totalorder %s1988_s20, 0 }
 0x34b   : > { %s935_s10 = scalar_lea.sflag [#allocation6], %s934_s24 }
 0x34c   : > { %p1263_p9 = pnand %p1990_p7, %p1989_p5 }
 0x34e   : > { %1543 = dma.done.wait (!%p1263_p9), %s935_s10, 256  }
 0x34f   : > { %1545 = vsyncadd (!%p1263_p9), %s935_s10, 4294967040  ;;  %s24_s26 = sadd.s32 1, %s1568_s26   ;;  %s1991_s21 = smov %s1552_s22 }
 0x350   : > { %p21_p0 = scmp.ge.s32.totalorder %s24_s26, 4   ;;  %s1992_s22 = smov %s1556_s23 }
 0x351   : > { %s1993_s23 = smov %s1788_s27  ;;  %s1994_s24 = smov %s1564_s25 }
 0x352   : > { %s1995_s25 = smov %s1997_s12  ;;  %23 = sbr.rel (!%p21_p0) target bundleno = 10 (0xa), region = 110 }
 0x359   :  { %940 = vsyncpa [#allocation5], 1 }
 0x35a   :  { %942 = vsyncpa [#allocation5 + $0x1], 1 }
 0x35b   :  { %943 = vsyncpa [#allocation8], 1 }
 0x35c   :  { %944 = vsyncpa [#allocation11], 1 }
 0x35d   :  { %945 = vsyncpa [#allocation6], 1 }
 0x35e   :  { %947 = vsyncpa [#allocation6 + $0x1], 1 }

</bundles_post_ra>
